<compile_context>
chip_gen: v7x
topology: tpu7x:2x2x1
jax: 0.10.0
libtpu: 0.0.40
codegen_flags: <defaults>
</compile_context>

<pallas_src>
import functools

import jax
import jax.numpy as jnp
from jax.experimental import pallas as pl
from jax.experimental.pallas import tpu as pltpu


# --------------------------------------------------------------------------
# VMEM budgeting helpers
# --------------------------------------------------------------------------
def _vmem_capacity_bytes():
    """Physical VMEM per TensorCore (128 MiB on v5e/v6e, 64 MiB on v7x)."""
    try:
        cap = int(getattr(pltpu.get_tpu_info(), "vmem_capacity_bytes", 0))
        if cap > 0:
            return cap
    except Exception:
        pass
    return 64 * 1024 * 1024          # conservative fallback (v7x per-TC)


def _vmem_limit(need_bytes, cap_bytes):
    """Explicit scoped-VMEM limit: need + headroom, capped below physical."""
    return int(min(int(cap_bytes * 0.9), max(32 << 20, need_bytes + (8 << 20))))


# --------------------------------------------------------------------------
# Fused path: pool -> gate -> rescale in ONE kernel (x read once, written once)
# --------------------------------------------------------------------------
def _fused_kernel(x_ref, w1s_ref, b1_ref, w2_ref, b2_ref, o_ref, *, nb):
    # x_ref/o_ref: (nb, C, HW); w1s: (Cmid, C) pre-scaled by 1/HW; b1: (Cmid,1);
    # w2: (C, Cmid); b2: (C, 1).  nb is small (<= 8) so the per-image gate is
    # statically unrolled; the tiny compute hides under the HBM stream.
    for b in range(nb):
        # Global average pool as a sum (1/HW is folded into w1s).
        p = jnp.sum(x_ref[b].astype(jnp.float32), axis=1, keepdims=True)    # (C, 1)
        # Squeeze-excite gate, column form (no in-kernel transposes).
        h = jnp.dot(w1s_ref[...], p, preferred_element_type=jnp.float32) + b1_ref[...]
        h = jnp.maximum(h, 0.0)
        z = jnp.dot(w2_ref[...], h, preferred_element_type=jnp.float32) + b2_ref[...]
        g = jax.nn.sigmoid(z)                                               # (C, 1)
        # Channel-wise rescale in the input's native dtype (lane broadcast).
        o_ref[b] = x_ref[b] * g.astype(o_ref.dtype)


# --------------------------------------------------------------------------
# Tiled path, pass 1: streaming pool with the gate fused into the finalize
# --------------------------------------------------------------------------
def _pool_gate_kernel(x_ref, w1s_ref, b1_ref, w2_ref, b2_ref, g_ref, *,
                      hw, thw, mask_needed):
    # x_ref: (1, C, thw); g_ref: (1, C, 1) f32, resident across the t axis.
    t = pl.program_id(1)

    @pl.when(t == 0)
    def _():
        g_ref[...] = jnp.zeros_like(g_ref)

    x = x_ref[...].astype(jnp.float32)                        # (1, C, thw)
    if mask_needed:
        # The last tile extends past HW; its out-of-range lanes contain
        # unspecified data and must not contribute to the sum.
        lane = jax.lax.broadcasted_iota(jnp.int32, x.shape, 2)
        x = jnp.where(t * thw + lane < hw, x, 0.0)
    # Accumulate partial sums directly in the resident f32 output block.
    g_ref[...] += jnp.sum(x, axis=2, keepdims=True)

    @pl.when(t == pl.num_programs(1) - 1)
    def _():
        p = g_ref[0]                                          # (C, 1) pooled sum
        h = jnp.dot(w1s_ref[...], p, preferred_element_type=jnp.float32) + b1_ref[...]
        h = jnp.maximum(h, 0.0)
        z = jnp.dot(w2_ref[...], h, preferred_element_type=jnp.float32) + b2_ref[...]
        g_ref[0] = jax.nn.sigmoid(z)                          # overwrite with the gate


# --------------------------------------------------------------------------
# Tiled path, pass 2: channel-wise rescale (pure HBM-roofline stream)
# --------------------------------------------------------------------------
def _scale_kernel(x_ref, g_ref, o_ref):
    # Boundary tiles need no masking: garbage input lanes only produce garbage
    # output lanes, which are dropped on writeback.
    o_ref[0] = x_ref[0] * g_ref[0].astype(x_ref.dtype)


def _choose_hw_tile(C, HW, itemsize, target_bytes):
    """Largest lane-dense (multiple of 128) HW tile with <= ~target_bytes/buffer."""
    lanes = max(128, (target_bytes // max(1, C * itemsize)) // 128 * 128)
    if HW <= lanes:
        return ((HW + 127) // 128) * 128
    return int(lanes)


# --------------------------------------------------------------------------
# Public wrapper
# --------------------------------------------------------------------------
def ca_layer(x_nchw, w1, b1, w2, b2, *, force_tiled=False, hw_tile_bytes=None):
    """CALayer forward: x * sigmoid(W2 @ relu(W1 @ avgpool(x) + b1) + b2).

    x: (N, C, H, W);  w1: (C//r, C);  b1: (C//r,);  w2: (C, C//r);  b2: (C,).
    """
    N, C, H, W = x_nchw.shape
    HW = H * W
    Cmid = w1.shape[0]
    itemsize = jnp.dtype(x_nchw.dtype).itemsize
    x = x_nchw.reshape(N, C, HW)

    # Gate parameters in the layout the kernels consume (f32 column form, 1/HW
    # folded into the first conv).  Callers that run this layer repeatedly
    # should hoist these four tiny ops to parameter-setup time.
    w1s = (w1 * (1.0 / HW)).astype(jnp.float32)               # (Cmid, C)
    b1c = b1.reshape(Cmid, 1).astype(jnp.float32)
    w2f = w2.astype(jnp.float32)                              # (C, Cmid)
    b2c = b2.reshape(C, 1).astype(jnp.float32)

    cap = _vmem_capacity_bytes()
    slab = C * HW * itemsize                                  # one image, one pass
    fused_budget = min(cap // 2, 48 << 20)                    # pipelining headroom

    if not force_tiled and 4 * slab <= fused_budget:
        # ---------------- fused path: 2 HBM passes total ----------------
        nb = 1
        for cand in range(min(N, 8), 0, -1):                  # pack images per block
            if N % cand == 0 and 4 * cand * slab <= fused_budget:
                nb = cand
                break
        need = 4 * nb * slab                                  # in+out, double-buffered
        out = pl.pallas_call(
            functools.partial(_fused_kernel, nb=nb),
            out_shape=jax.ShapeDtypeStruct((N, C, HW), x.dtype),
            grid_spec=pltpu.PrefetchScalarGridSpec(
                num_scalar_prefetch=0,
                grid=(N // nb,),
                in_specs=[
                    pl.BlockSpec((nb, C, HW), lambda i: (i, 0, 0)),
                    pl.BlockSpec((Cmid, C), lambda i: (0, 0)),
                    pl.BlockSpec((Cmid, 1), lambda i: (0, 0)),
                    pl.BlockSpec((C, Cmid), lambda i: (0, 0)),
                    pl.BlockSpec((C, 1), lambda i: (0, 0)),
                ],
                out_specs=pl.BlockSpec((nb, C, HW), lambda i: (i, 0, 0)),
            ),
            compiler_params=pltpu.CompilerParams(
                dimension_semantics=("parallel",),
                vmem_limit_bytes=_vmem_limit(need, cap)),
            cost_estimate=pl.CostEstimate(
                flops=2 * N * C * HW + 4 * N * C * Cmid,
                transcendentals=N * C,
                bytes_accessed=2 * N * C * HW * itemsize),
        )(x, w1s, b1c, w2f, b2c)
        return out.reshape(N, C, H, W)

    # -------------------- tiled path: 3 HBM passes total --------------------
    target = hw_tile_bytes if hw_tile_bytes is not None else (4 << 20)
    thw = _choose_hw_tile(C, HW, itemsize, target)
    n_t = (HW + thw - 1) // thw
    tile_bytes = C * thw * itemsize
    mask_needed = (HW % thw) != 0

    # Pass 1: streaming global average pool + fused gate -> (N, C, 1) f32.
    gate = pl.pallas_call(
        functools.partial(_pool_gate_kernel, hw=HW, thw=thw, mask_needed=mask_needed),
        out_shape=jax.ShapeDtypeStruct((N, C, 1), jnp.float32),
        grid_spec=pltpu.PrefetchScalarGridSpec(
            num_scalar_prefetch=0,
            grid=(N, n_t),
            in_specs=[
                pl.BlockSpec((1, C, thw), lambda n, t: (n, 0, t)),
                pl.BlockSpec((Cmid, C), lambda n, t: (0, 0)),
                pl.BlockSpec((Cmid, 1), lambda n, t: (0, 0)),
                pl.BlockSpec((C, Cmid), lambda n, t: (0, 0)),
                pl.BlockSpec((C, 1), lambda n, t: (0, 0)),
            ],
            out_specs=pl.BlockSpec((1, C, 1), lambda n, t: (n, 0, 0)),
        ),
        compiler_params=pltpu.CompilerParams(
            dimension_semantics=("parallel", "arbitrary"),
            vmem_limit_bytes=_vmem_limit(2 * tile_bytes, cap)),
        cost_estimate=pl.CostEstimate(
            flops=N * C * HW + 4 * N * C * Cmid,
            transcendentals=N * C,
            bytes_accessed=N * C * HW * itemsize + N * C * 4),
    )(x, w1s, b1c, w2f, b2c)

    # Pass 2: rescale.  Writes the exact (N, C, HW) output; no pad / slice.
    out = pl.pallas_call(
        _scale_kernel,
        out_shape=jax.ShapeDtypeStruct((N, C, HW), x.dtype),
        grid_spec=pltpu.PrefetchScalarGridSpec(
            num_scalar_prefetch=0,
            grid=(N, n_t),
            in_specs=[
                pl.BlockSpec((1, C, thw), lambda n, t: (n, 0, t)),
                pl.BlockSpec((1, C, 1), lambda n, t: (n, 0, 0)),
            ],
            out_specs=pl.BlockSpec((1, C, thw), lambda n, t: (n, 0, t)),
        ),
        compiler_params=pltpu.CompilerParams(
            dimension_semantics=("parallel", "parallel"),
            vmem_limit_bytes=_vmem_limit(4 * tile_bytes, cap)),
        cost_estimate=pl.CostEstimate(
            flops=N * C * HW, transcendentals=0,
            bytes_accessed=2 * N * C * HW * itemsize + N * C * 4),
    )(x, gate)

    return out.reshape(N, C, H, W)


# --------------------------------------------------------------------------
# Deterministic test harness
# --------------------------------------------------------------------------
def _init_params(key, channel, reduction):
    """Synthetic init mimicking Conv2d(kernel=1) parameter shapes."""
    cmid = channel // reduction
    k1, k2, k3, k4 = jax.random.split(key, 4)
    bound1 = 1.0 / (channel ** 0.5)
    w1 = jax.random.uniform(k1, (cmid, channel), jnp.float32, -bound1, bound1)
    b1 = jax.random.uniform(k2, (cmid,), jnp.float32, -bound1, bound1)
    bound2 = 1.0 / (cmid ** 0.5)
    w2 = jax.random.uniform(k3, (channel, cmid), jnp.float32, -bound2, bound2)
    b2 = jax.random.uniform(k4, (channel,), jnp.float32, -bound2, bound2)
    return w1, b1, w2, b2


def _reference(x, w1, b1, w2, b2):
    pooled = jnp.mean(x, axis=(2, 3))                         # (N, C)
    h = jnp.maximum(pooled @ w1.T + b1, 0.0)                  # (N, Cmid)
    g = jax.nn.sigmoid(h @ w2.T + b2)                         # (N, C)
    return x * g[:, :, None, None]


if __name__ == "__main__":
    key = jax.random.PRNGKey(0)
    kx1, kx2, kp = jax.random.split(key, 3)

    C, reduction = 32, 16                     # channel=32, reduction=16 -> Cmid=2
    w1, b1, w2, b2 = _init_params(kp, C, reduction)

    # 1) Fused single-kernel path (whole (C, HW) slab fits VMEM).
    x1 = jax.random.normal(kx1, (2, C, 16, 16), jnp.float32)
    out1 = jax.block_until_ready(ca_layer(x1, w1, b1, w2, b2))
    assert out1.shape == x1.shape and out1.dtype == x1.dtype
    assert jnp.allclose(out1, _reference(x1, w1, b1, w2, b2), atol=1e-5, rtol=1e-5)

    # 2) Tiled streaming path (forced, tiny tiles): exercises multi-tile
    #    accumulation, the masked partial last tile (HW = 400 = 3*128 + 16)
    #    and boundary output blocks with no host-side pad/slice.
    x2 = jax.random.normal(kx2, (2, C, 20, 20), jnp.float32)
    out2 = jax.block_until_ready(
        ca_layer(x2, w1, b1, w2, b2, force_tiled=True, hw_tile_bytes=128 * C * 4))
    assert out2.shape == x2.shape and out2.dtype == x2.dtype
    assert jnp.allclose(out2, _reference(x2, w1, b1, w2, b2), atol=1e-5, rtol=1e-5)

    print("KERNEL_OK")
</pallas_src>

<mosaic_0001>
module attributes {stable_mosaic.version = 11 : i64} {
  func.func @_fused_kernel(%arg0: i32, %arg1: memref<2x32x256xf32, #tpu.memory_space<vmem>>, %arg2: memref<2x32xf32, #tpu.memory_space<vmem>>, %arg3: memref<2x1xf32, #tpu.memory_space<vmem>>, %arg4: memref<32x2xf32, #tpu.memory_space<vmem>>, %arg5: memref<32x1xf32, #tpu.memory_space<vmem>>, %arg6: memref<2x32x256xf32, #tpu.memory_space<vmem>>) attributes {dimension_semantics = [#tpu.dimension_semantics<parallel>], iteration_bounds = array<i64: 1>, scalar_prefetch = 0 : i64, scratch_operands = 0 : i64, tpu.core_type = #tpu.core_type<tc>, window_params = [{transform_indices = @transform_0, window_bounds = array<i64: 2, 32, 256>}, {pipeline_mode = #tpu.pipeline_mode<synchronous>, transform_indices = @transform_1, window_bounds = array<i64: 2, 32>}, {pipeline_mode = #tpu.pipeline_mode<synchronous>, transform_indices = @transform_2, window_bounds = array<i64: 2, 1>}, {pipeline_mode = #tpu.pipeline_mode<synchronous>, transform_indices = @transform_3, window_bounds = array<i64: 32, 2>}, {pipeline_mode = #tpu.pipeline_mode<synchronous>, transform_indices = @transform_4, window_bounds = array<i64: 32, 1>}, {transform_indices = @transform_5, window_bounds = array<i64: 2, 32, 256>}]} {
    %c0 = arith.constant 0 : index
    %c0_0 = arith.constant 0 : index
    %c0_1 = arith.constant 0 : index
    %0 = vector.load %arg1[%c0, %c0_0, %c0_1] : memref<2x32x256xf32, #tpu.memory_space<vmem>>, vector<1x32x256xf32>
    %1 = vector.shape_cast %0 : vector<1x32x256xf32> to vector<32x256xf32>
    %cst = arith.constant dense<0.000000e+00> : vector<32xf32>
    %2 = vector.multi_reduction <add>, %1, %cst [1] : vector<32x256xf32> to vector<32xf32>
    %3 = vector.shape_cast %2 : vector<32xf32> to vector<32x1xf32>
    %c0_2 = arith.constant 0 : index
    %c0_3 = arith.constant 0 : index
    %4 = vector.load %arg2[%c0_2, %c0_3] : memref<2x32xf32, #tpu.memory_space<vmem>>, vector<2x32xf32>
    %cst_4 = arith.constant dense<0.000000e+00> : vector<2x1xf32>
    %5 = tpu.matmul %4, %3, %cst_4 {dimension_numbers = #tpu.dot_dimension_numbers<[1], [0], [0], [1], [0, 0, 1, 1], [], []>} : vector<2x32xf32>, vector<32x1xf32>, vector<2x1xf32> -> vector<2x1xf32>
    %c0_5 = arith.constant 0 : index
    %c0_6 = arith.constant 0 : index
    %6 = vector.load %arg3[%c0_5, %c0_6] : memref<2x1xf32, #tpu.memory_space<vmem>>, vector<2x1xf32>
    %7 = arith.addf %5, %6 : vector<2x1xf32>
    %cst_7 = arith.constant 0.000000e+00 : f32
    %8 = vector.broadcast %cst_7 : f32 to vector<2x1xf32>
    %9 = arith.maximumf %7, %8 : vector<2x1xf32>
    %c0_8 = arith.constant 0 : index
    %c0_9 = arith.constant 0 : index
    %10 = vector.load %arg4[%c0_8, %c0_9] : memref<32x2xf32, #tpu.memory_space<vmem>>, vector<32x2xf32>
    %cst_10 = arith.constant dense<0.000000e+00> : vector<32x1xf32>
    %11 = tpu.matmul %10, %9, %cst_10 {dimension_numbers = #tpu.dot_dimension_numbers<[1], [0], [0], [1], [0, 0, 1, 1], [], []>} : vector<32x2xf32>, vector<2x1xf32>, vector<32x1xf32> -> vector<32x1xf32>
    %c0_11 = arith.constant 0 : index
    %c0_12 = arith.constant 0 : index
    %12 = vector.load %arg5[%c0_11, %c0_12] : memref<32x1xf32, #tpu.memory_space<vmem>>, vector<32x1xf32>
    %13 = arith.addf %11, %12 : vector<32x1xf32>
    %14 = arith.negf %13 : vector<32x1xf32>
    %15 = math.exp %14 : vector<32x1xf32>
    %cst_13 = arith.constant 1.000000e+00 : f32
    %16 = vector.broadcast %cst_13 : f32 to vector<32x1xf32>
    %17 = arith.addf %16, %15 : vector<32x1xf32>
    %18 = arith.divf %16, %17 : vector<32x1xf32>
    %c0_14 = arith.constant 0 : index
    %c0_15 = arith.constant 0 : index
    %c0_16 = arith.constant 0 : index
    %19 = vector.load %arg1[%c0_14, %c0_15, %c0_16] : memref<2x32x256xf32, #tpu.memory_space<vmem>>, vector<1x32x256xf32>
    %20 = vector.shape_cast %19 : vector<1x32x256xf32> to vector<32x256xf32>
    %21 = vector.broadcast %18 : vector<32x1xf32> to vector<32x256xf32>
    %22 = arith.mulf %20, %21 : vector<32x256xf32>
    %c0_17 = arith.constant 0 : index
    %c0_18 = arith.constant 0 : index
    %c0_19 = arith.constant 0 : index
    %23 = vector.load %arg6[%c0_17, %c0_18, %c0_19] : memref<2x32x256xf32, #tpu.memory_space<vmem>>, vector<1x32x256xf32>
    %24 = vector.shape_cast %23 : vector<1x32x256xf32> to vector<32x256xf32>
    %25 = vector.shape_cast %22 : vector<32x256xf32> to vector<1x32x256xf32>
    tpu.vector_store %arg6[%c0_17, %c0_18, %c0_19], %25 {strides = array<i32>} : memref<2x32x256xf32, #tpu.memory_space<vmem>>, vector<1x32x256xf32>,
    %c1 = arith.constant 1 : index
    %c0_20 = arith.constant 0 : index
    %c0_21 = arith.constant 0 : index
    %26 = vector.load %arg1[%c1, %c0_20, %c0_21] : memref<2x32x256xf32, #tpu.memory_space<vmem>>, vector<1x32x256xf32>
    %27 = vector.shape_cast %26 : vector<1x32x256xf32> to vector<32x256xf32>
    %cst_22 = arith.constant dense<0.000000e+00> : vector<32xf32>
    %28 = vector.multi_reduction <add>, %27, %cst_22 [1] : vector<32x256xf32> to vector<32xf32>
    %29 = vector.shape_cast %28 : vector<32xf32> to vector<32x1xf32>
    %c0_23 = arith.constant 0 : index
    %c0_24 = arith.constant 0 : index
    %30 = vector.load %arg2[%c0_23, %c0_24] : memref<2x32xf32, #tpu.memory_space<vmem>>, vector<2x32xf32>
    %cst_25 = arith.constant dense<0.000000e+00> : vector<2x1xf32>
    %31 = tpu.matmul %30, %29, %cst_25 {dimension_numbers = #tpu.dot_dimension_numbers<[1], [0], [0], [1], [0, 0, 1, 1], [], []>} : vector<2x32xf32>, vector<32x1xf32>, vector<2x1xf32> -> vector<2x1xf32>
    %c0_26 = arith.constant 0 : index
    %c0_27 = arith.constant 0 : index
    %32 = vector.load %arg3[%c0_26, %c0_27] : memref<2x1xf32, #tpu.memory_space<vmem>>, vector<2x1xf32>
    %33 = arith.addf %31, %32 : vector<2x1xf32>
    %cst_28 = arith.constant 0.000000e+00 : f32
    %34 = vector.broadcast %cst_28 : f32 to vector<2x1xf32>
    %35 = arith.maximumf %33, %34 : vector<2x1xf32>
    %c0_29 = arith.constant 0 : index
    %c0_30 = arith.constant 0 : index
    %36 = vector.load %arg4[%c0_29, %c0_30] : memref<32x2xf32, #tpu.memory_space<vmem>>, vector<32x2xf32>
    %cst_31 = arith.constant dense<0.000000e+00> : vector<32x1xf32>
    %37 = tpu.matmul %36, %35, %cst_31 {dimension_numbers = #tpu.dot_dimension_numbers<[1], [0], [0], [1], [0, 0, 1, 1], [], []>} : vector<32x2xf32>, vector<2x1xf32>, vector<32x1xf32> -> vector<32x1xf32>
    %c0_32 = arith.constant 0 : index
    %c0_33 = arith.constant 0 : index
    %38 = vector.load %arg5[%c0_32, %c0_33] : memref<32x1xf32, #tpu.memory_space<vmem>>, vector<32x1xf32>
    %39 = arith.addf %37, %38 : vector<32x1xf32>
    %40 = arith.negf %39 : vector<32x1xf32>
    %41 = math.exp %40 : vector<32x1xf32>
    %cst_34 = arith.constant 1.000000e+00 : f32
    %42 = vector.broadcast %cst_34 : f32 to vector<32x1xf32>
    %43 = arith.addf %42, %41 : vector<32x1xf32>
    %44 = arith.divf %42, %43 : vector<32x1xf32>
    %c1_35 = arith.constant 1 : index
    %c0_36 = arith.constant 0 : index
    %c0_37 = arith.constant 0 : index
    %45 = vector.load %arg1[%c1_35, %c0_36, %c0_37] : memref<2x32x256xf32, #tpu.memory_space<vmem>>, vector<1x32x256xf32>
    %46 = vector.shape_cast %45 : vector<1x32x256xf32> to vector<32x256xf32>
    %47 = vector.broadcast %44 : vector<32x1xf32> to vector<32x256xf32>
    %48 = arith.mulf %46, %47 : vector<32x256xf32>
    %c1_38 = arith.constant 1 : index
    %c0_39 = arith.constant 0 : index
    %c0_40 = arith.constant 0 : index
    %49 = vector.load %arg6[%c1_38, %c0_39, %c0_40] : memref<2x32x256xf32, #tpu.memory_space<vmem>>, vector<1x32x256xf32>
    %50 = vector.shape_cast %49 : vector<1x32x256xf32> to vector<32x256xf32>
    %51 = vector.shape_cast %48 : vector<32x256xf32> to vector<1x32x256xf32>
    tpu.vector_store %arg6[%c1_38, %c0_39, %c0_40], %51 {strides = array<i32>} : memref<2x32x256xf32, #tpu.memory_space<vmem>>, vector<1x32x256xf32>,
    return
  }
  func.func @transform_0(%arg0: i32) -> (i32, i32, i32) {
    %c0_i32 = arith.constant 0 : i32
    %c0_i32_0 = arith.constant 0 : i32
    %c0_i32_1 = arith.constant 0 : i32
    return %arg0, %c0_i32, %c0_i32_0 : i32, i32, i32
  }
  func.func @transform_1(%arg0: i32) -> (i32, i32) {
    %c0_i32 = arith.constant 0 : i32
    %c0_i32_0 = arith.constant 0 : i32
    %c0_i32_1 = arith.constant 0 : i32
    return %c0_i32, %c0_i32_0 : i32, i32
  }
  func.func @transform_2(%arg0: i32) -> (i32, i32) {
    %c0_i32 = arith.constant 0 : i32
    %c0_i32_0 = arith.constant 0 : i32
    %c0_i32_1 = arith.constant 0 : i32
    return %c0_i32, %c0_i32_0 : i32, i32
  }
  func.func @transform_3(%arg0: i32) -> (i32, i32) {
    %c0_i32 = arith.constant 0 : i32
    %c0_i32_0 = arith.constant 0 : i32
    %c0_i32_1 = arith.constant 0 : i32
    return %c0_i32, %c0_i32_0 : i32, i32
  }
  func.func @transform_4(%arg0: i32) -> (i32, i32) {
    %c0_i32 = arith.constant 0 : i32
    %c0_i32_0 = arith.constant 0 : i32
    %c0_i32_1 = arith.constant 0 : i32
    return %c0_i32, %c0_i32_0 : i32, i32
  }
  func.func @transform_5(%arg0: i32) -> (i32, i32, i32) {
    %c0_i32 = arith.constant 0 : i32
    %c0_i32_0 = arith.constant 0 : i32
    %c0_i32_1 = arith.constant 0 : i32
    return %arg0, %c0_i32, %c0_i32_0 : i32, i32, i32
  }
}

</mosaic_0001>

<bundles_post_ra>
// kernel: tpu_custom_call.1
= control target key start
LH: loop header
LB: loop body
LE: loop exit
PB: predicated region body
PF: predicated region fallthrough
CT: control target
= control target key end

     0   :  { %10 = vsyncpa [#allocation3], 0  ;;  %s969_s0 = inlined_call_operand.hbm [shape: f32[2,32,256], index: 0, kind: input, shape index: {}]   ;;  %s970_s1 = inlined_call_operand.vmem [shape: f32[2,32], index: 1, kind: input, shape index: {}]   ;;  %s971_s2 = inlined_call_operand.vmem [shape: f32[2,1], index: 2, kind: input, shape index: {}]   ;;  %s972_s3 = inlined_call_operand.vmem [shape: f32[32,2], index: 3, kind: input, shape index: {}]   ;;  %s973_s4 = inlined_call_operand.vmem [shape: f32[32,1], index: 4, kind: input, shape index: {}]   ;;  %s974_s5 = inlined_call_operand.hbm [shape: f32[2,32,256], index: 5, kind: output, shape index: {}]  }
   0x1   :  { %11 = vsyncpa [#allocation4], 0  ;;  %s767_s18 = smov [#allocation2]   ;;  %s719_s22 = scalar_lea.hbm %s969_s0, 2048 }
   0x2   :  { %s17_s19 = sshll.u32 %s767_s18, 4  ;;  %p720_p0 = scmp.ne.s32.totalorder %s969_s0, %s719_s22  ;;  %s18_s19 = int_to_ptr.vmem [resolvable:$true] %s17_s19 }
   0x3   :  { %p723_p1 = scmp.lt.u32.totalorder %s719_s22, %s969_s0 }
   0x5   :  { %p725_p2 = pnand %p723_p1, %p720_p0 }
   0x7   :  { %728 = shalt.err (!%p725_p2)
}
   0x8   :  { %s729_s27 = scalar_lea.vmem %s18_s19, 2048  ;;  %p734_p4 = scmp.lt.s32.totalorder %s18_s19, %s18_s19 }
   0x9   :  { %p730_p3 = scmp.ne.s32.totalorder %s18_s19, %s729_s27  ;;  %p735_p5 = scmp.lt.s32.totalorder %s729_s27, %s729_s27 }
   0xb   :  { %p736_p6 = por %p735_p5, %p734_p4 }
   0xd   :  { %p737_p7 = pnand %p736_p6, %p730_p3 }
   0xf   :  { %740 = shalt.err (!%p737_p7)
}
  0x10   :  { %s768_s28 = smov 256   ;;  %s769_s29 = smov 16  }
  0x11   :  { %23 = dma.hbm_to_vmem [thread:$0]  %s969_s0, 2048, %s18_s19, [#allocation3], %s768_s28, %s768_s28, %s769_s29  }
  0x12   :  { %763 = dma.done.wait [#allocation3], 2048  }
  0x13   :  { %764 = vsyncadd [#allocation3], 4294965248  ;;  %v820_v0 = vld [vmem:[#allocation2 + $0x20] sm:$0xff]  ;;  %v822_v1 = vld [vmem:[#allocation2 + $0x28] sm:$0xff]  ;;  %v770_v12 = vmov 0.0|0.0   ;;  %vm771_vm0 = vmmov 0  }
  0x14   :  { %v824_v2 = vld [vmem:[#allocation2] sm:$0xff]  ;;  %v49_v3 = vadd.f32 %v822_v1, %v820_v0  ;;  %v828_v4 = vld [vmem:[#allocation2 + $0x8] sm:$0xff]  ;;  %v830_v5 = vld [vmem:[#allocation2 + $0x30] sm:$0xff]  ;;  %663 = vmatprep.subr.bf16.mxu0 %v770_v12  ;;  %v772_v13 = vmov 0.0   ;;  %vm57_vm1 = vcmask 261120   ;;  %vm140_vm2 = vcmask 15360  }
  0x15   :  { %v832_v6 = vld [vmem:[#allocation2 + $0x38] sm:$0xff]  ;;  %v43_v7 = vadd.f32 %v828_v4, %v824_v2  ;;  %v836_v8 = vld [vmem:[#allocation2 + $0x10] sm:$0xff]  ;;  %633 = vmatprep.mubr.msk.f32.mxu0 %vm771_vm0, %v772_v13  ;;  %v849_v16 = vld [vmem:[#allocation2 + $0x40] sm:$0xff]  ;;  %vm153_vm3 = vcmask 1041408   ;;  %v773_v49 = vmov 0  }
  0x16   :  { %v838_v9 = vld [vmem:[#allocation2 + $0x18] sm:$0xff]  ;;  %50 = vadd.xlane.f32.xlu1 %v49_v3  ;;  %v52_v10 = vadd.f32 %v832_v6, %v830_v5  ;;  %v845_v14 = vld [vmem:[#allocation2 + $0x50] sm:$0xff]  ;;  %v853_v18 = vld [vmem:[#allocation2 + $0x48] sm:$0xff]  ;;  %685 = vset.pattern.permute.xlu0 %v773_v49 }
  0x17   :  { %44 = vadd.xlane.f32.xlu0 %v43_v7  ;;  %v46_v11 = vadd.f32 %v838_v9, %v836_v8  ;;  %v847_v15 = vld [vmem:[#allocation2 + $0x58] sm:$0xff]  ;;  %v855_v19 = vld [vmem:[#allocation2 + $0x70] sm:$0xff]  ;;  %v311_v21 = vadd.f32 %v853_v18, %v849_v16  ;;  %v861_v22 = vld [vmem:[#allocation2 + $0x60] sm:$0xff]  ;;  %686 = vset.pattern.permute.xlu1 %v773_v49 }
  0x18   :  { %v314_v17 = vadd.f32 %v847_v15, %v845_v14  ;;  %v857_v20 = vld [vmem:[#allocation2 + $0x78] sm:$0xff]  ;;  %v863_v23 = vld [vmem:[#allocation2 + $0x68] sm:$0xff]  ;;  %v55_v32 = vld [vmem:[%s970_s1] sm:$0x3] }
  0x19   :  { %v320_v24 = vadd.f32 %v857_v20, %v855_v19  ;;  %v317_v25 = vadd.f32 %v863_v23, %v861_v22  ;;  %v132_v33 = vld [vmem:[%s972_s3] sm:$0xff]  ;;  %v133_v42 = vld [vmem:[%s972_s3 + $0x8] sm:$0xff]  ;;  %v134_v45 = vld [vmem:[%s972_s3 + $0x10] sm:$0xff] }
  0x1a   :  { %53 = vadd.xlane.f32.xlu1 %v52_v10  ;;  %638 = vmatprep.mubr.msk.f32.mxu1 %vm140_vm2, %v132_v33  ;;  %v56_v34 = vld [vmem:[%s971_s2] sm:$0x3]  ;;  %v135_v47 = vld [vmem:[%s972_s3 + $0x18] sm:$0xff]  ;;  %v904_v50 = vld [vmem:[%s973_s4 + $0x8] sm:$0xff] }
  0x1b   :  { %47 = vadd.xlane.f32.xlu0 %v46_v11  ;;  %v323_v48 = vld [vmem:[%s970_s1] sm:$0x3]  ;;  %v916_v56 = vld [vmem:[%s973_s4 + $0x18] sm:$0xff]  ;;  %v921_v58 = vld [vmem:[%s973_s4 + $0x10] sm:$0xff] }
  0x1c   :  { %v909_v51 = vld [vmem:[%s973_s4] sm:$0xff] }
  0x1d   :  { %v324_v3 = vld [vmem:[%s971_s2] sm:$0x3]  ;;  %s774_s2 = smov [#allocation5]  }
  0x1e   :  { %315 = vadd.xlane.f32.xlu1 %v314_v17  ;;  %s573_s4 = sshll.u32 %s774_s2, 4  ;;  %s574_s4 = int_to_ptr.vmem [resolvable:$true] %s573_s4 }
  0x1f   :  { %312 = vadd.xlane.f32.xlu0 %v311_v21  ;;  %s741_s30 = scalar_lea.vmem %s574_s4, 2048  ;;  %p746_p9 = scmp.lt.s32.totalorder %s574_s4, %s574_s4 }
  0x20   :  { %p742_p8 = scmp.ne.s32.totalorder %s574_s4, %s741_s30  ;;  %p747_p10 = scmp.lt.s32.totalorder %s741_s30, %s741_s30 }
  0x22   :  { %321 = vadd.xlane.f32.xlu1 %v320_v24  ;;  %p748_p11 = por %p747_p10, %p746_p9 }
  0x23   :  { %318 = vadd.xlane.f32.xlu0 %v317_v25 }
  0x24   :  { %p749_p12 = pnand %p748_p11, %p742_p8 }
  0xa3   :  { %v51_v26 = vpop.xlane.xlu1 %50 }
  0xa4   :  { %v45_v27 = vpop.xlane.xlu0 %44 }
  0xa7   :  { %v54_v30 = vpop.xlane.xlu1 %53 }
  0xa8   :  { %v48_v28 = vpop.xlane.xlu0 %47  ;;  %v667_v31 = vpack.c.bf16 %v54_v30, %v51_v26 }
  0xa9   :  { %v664_v29 = vpack.c.bf16 %v48_v28, %v45_v27 }
  0xab   :  { %665 = vmatpush3.bf16.msra.mxu0 %v664_v29  ;;  %v316_v35 = vpop.xlane.xlu1 %315 }
  0xac   :  { %666 = vmatprep.subr.bf16.mxu0 %v770_v12  ;;  %v313_v36 = vpop.xlane.xlu0 %312 }
  0xad   :  { %v670_v41 = vpack.c.bf16 %v316_v35, %v313_v36 }
  0xaf   :  { %668 = vmatpush3.bf16.msra.mxu0 %v667_v31  ;;  %v322_v43 = vpop.xlane.xlu1 %321 }
  0xb0   :  { %v319_v44 = vpop.xlane.xlu0 %318 }
  0xb1   :  { %v673_v46 = vpack.c.bf16 %v322_v43, %v319_v44 }
  0xb2   :  { %634 = vmatmul.mubr.msk.f32.vlgmr.msra.gmra.mrb[0].mxu0 %vm57_vm1, %v55_v32 }
  0xb3   :  { %657 = vmatprep.mubr.msk.f32.mxu0 %vm140_vm2, %v132_v33 }
 0x185   :  { %v127_v37 = vpop.f32.mrb[0].mxu0 }
 0x186   :  { %v128_v38 = vadd.f32 %v127_v37, %v56_v34  ;;  %v635_v39 = vpop.f32.mrb[1].mxu0 }
 0x188   :  { %v131_v40 = vmax.f32 %v128_v38, 0.0 }
 0x18a   :  { %636 = vmatprep.subr.msk.mxu1 %vm153_vm3, %v131_v40 }
 0x18b   :  { %637 = vmatpush3.msk.msra.mxu1 %vm153_vm3, %v131_v40 }
 0x18c   :  { %639 = vmatmul.mubr.msk.f32.vlgmr.msra.gmra.mrb[0].mxu1 %vm140_vm2, %v133_v42  ;;  %669 = vmatprep.subr.bf16.mxu1 %v770_v12 }
 0x18d   :  { %671 = vmatpush3.bf16.msra.mxu1 %v670_v41  ;;  %641 = vmatprep.mubr.msk.f32.mxu1 %vm140_vm2, %v134_v45 }
 0x18e   :  { %672 = vmatprep.subr.bf16.mxu1 %v770_v12 }
 0x190   :  { %642 = vmatmul.mubr.msk.f32.gmra.mrb[2].mxu1 %vm140_vm2, %v135_v47 }
 0x191   :  { %674 = vmatpush3.bf16.msra.mxu1 %v673_v46  ;;  %652 = vmatprep.mubr.msk.f32.mxu1 %vm771_vm0, %v772_v13 }
 0x194   :  { %653 = vmatmul.mubr.msk.f32.vlgmr.msra.gmra.mrb[4].mxu1 %vm57_vm1, %v323_v48 }
 0x195   :  { %660 = vmatprep.mubr.msk.f32.mxu1 %vm140_vm2, %v134_v45 }
 0x25f   :  { %v640_v52 = vpop.f32.mrb[0].mxu1 }
 0x260   :  { %v229_v53 = vadd.f32 %v640_v52, %v904_v50  ;;  %v223_v54 = vpop.f32.mrb[1].mxu1 }
 0x261   :  { %v224_v55 = vadd.f32 %v223_v54, %v909_v51 }
 0x262   :  { %v592_v57 = vmul.f32 -1.442695, %v229_v53 }
 0x263   :  { %v591_v59 = vmul.f32 -1.442695, %v224_v55  ;;  %v643_v60 = vpop.f32.mrb[2].mxu1 }
 0x264   :  { %687 = vpow2.f32 %v592_v57  ;;  %v239_v61 = vadd.f32 %v643_v60, %v916_v56  ;;  %v233_v62 = vpop.f32.mrb[3].mxu1 }
 0x265   :  { %689 = vpow2.f32 %v591_v59  ;;  %v234_v63 = vadd.f32 %v233_v62, %v921_v58 }
 0x266   :  { %v594_v7 = vmul.f32 -1.442695, %v239_v61 }
 0x267   :  { %v593_v10 = vmul.f32 -1.442695, %v234_v63  ;;  %v394_v11 = vpop.f32.mrb[4].mxu1 }
 0x268   :  { %691 = vpow2.f32 %v594_v7  ;;  %v395_v12 = vadd.f32 %v394_v11, %v324_v3  ;;  %v654_v13 = vpop.f32.mrb[5].mxu1 }
 0x269   :  { %693 = vpow2.f32 %v593_v10 }
 0x26a   :  { %v398_v17 = vmax.f32 %v395_v12, 0.0 }
 0x26c   :  { %655 = vmatprep.subr.msk.mxu0 %vm153_vm3, %v398_v17  ;;  %675 = vmatprep.subr.msk.mxu1 %vm153_vm3, %v398_v17 }
 0x26d   :  { %656 = vmatpush3.msk.msra.mxu0 %vm153_vm3, %v398_v17  ;;  %676 = vmatpush3.msk.msra.mxu1 %vm153_vm3, %v398_v17 }
 0x26e   :  { %v688_v21 = vpop.eup %687  ;;  %658 = vmatmul.mubr.msk.f32.vlgmr.msra.gmra.mrb[2].mxu0 %vm140_vm2, %v133_v42  ;;  %661 = vmatmul.mubr.msk.f32.vlgmr.msra.gmra.mrb[6].mxu1 %vm140_vm2, %v135_v47 }
 0x26f   :  { %v690_v24 = vpop.eup %689  ;;  %v255_v25 = vadd.f32 1.0, %v688_v21 }
 0x270   :  { %v254_v26 = vadd.f32 1.0, %v690_v24 }
 0x271   :  { %695 = vrcp.f32 %v255_v25 }
 0x272   :  { %v692_v27 = vpop.eup %691  ;;  %697 = vrcp.f32 %v254_v26 }
 0x273   :  { %v694_v28 = vpop.eup %693  ;;  %v257_v29 = vadd.f32 1.0, %v692_v27 }
 0x274   :  { %v256_v30 = vadd.f32 1.0, %v694_v28 }
 0x275   :  { %699 = vrcp.f32 %v257_v29 }
 0x276   :  { %701 = vrcp.f32 %v256_v30 }
 0x27b   :  { %v696_v31 = vpop.eup %695 }
 0x27c   :  { %v698_v32 = vpop.eup %697  ;;  %273 = vperm.xlu1 %686, %v696_v31  }
 0x27d   :  { %268 = vperm.xlu0 %685, %v698_v32  }
 0x27f   :  { %v700_v33 = vpop.eup %699 }
 0x280   :  { %283 = vperm.xlu1 %686, %v700_v33   ;;  %v702_v34 = vpop.eup %701 }
 0x284   :  { %278 = vperm.xlu1 %686, %v702_v34  }
 0x2fb   :  { %v274_v35 = vpop.permute.xlu1 %273 }
 0x2fc   :  { %v288_v36 = vmul.f32 %v274_v35, %v836_v8  ;;  %v289_v37 = vmul.f32 %v274_v35, %v838_v9  ;;  %v269_v38 = vpop.permute.xlu0 %268 }
 0x2fd   :  { %v286_v39 = vmul.f32 %v269_v38, %v824_v2  ;;  %v287_v40 = vmul.f32 %v269_v38, %v828_v4 }
 0x2fe   :  { %296 = vst [vmem:[#allocation5 + $0x10] sm:$0xff] %v288_v36  ;;  %297 = vst [vmem:[#allocation5 + $0x18] sm:$0xff] %v289_v37 }
 0x2ff   :  { %294 = vst [vmem:[#allocation5] sm:$0xff] %v286_v39  ;;  %295 = vst [vmem:[#allocation5 + $0x8] sm:$0xff] %v287_v40  ;;  %v284_v41 = vpop.permute.xlu1 %283 }
 0x300   :  { %v292_v42 = vmul.f32 %v284_v41, %v830_v5  ;;  %v293_v43 = vmul.f32 %v284_v41, %v832_v6 }
 0x302   :  { %300 = vst [vmem:[#allocation5 + $0x30] sm:$0xff] %v292_v42  ;;  %301 = vst [vmem:[#allocation5 + $0x38] sm:$0xff] %v293_v43 }
 0x303   :  { %v279_v44 = vpop.permute.xlu1 %278 }
 0x304   :  { %v290_v8 = vmul.f32 %v279_v44, %v820_v0  ;;  %v291_v9 = vmul.f32 %v279_v44, %v822_v1 }
 0x306   :  { %298 = vst [vmem:[#allocation5 + $0x20] sm:$0xff] %v290_v8  ;;  %299 = vst [vmem:[#allocation5 + $0x28] sm:$0xff] %v291_v9 }
 0x341   :  { %v659_v2 = vpop.f32.mrb[2].mxu0  ;;  %v662_v4 = vpop.f32.mrb[6].mxu1 }
 0x342   :  { %v494_v45 = vadd.f32 %v659_v2, %v904_v50  ;;  %v488_v46 = vpop.f32.mrb[3].mxu0  ;;  %v498_v47 = vpop.f32.mrb[7].mxu1  ;;  %v504_v0 = vadd.f32 %v662_v4, %v916_v56 }
 0x343   :  { %v489_v48 = vadd.f32 %v488_v46, %v909_v51  ;;  %v499_v5 = vadd.f32 %v498_v47, %v921_v58 }
 0x344   :  { %v602_v6 = vmul.f32 -1.442695, %v494_v45  ;;  %v604_v1 = vmul.f32 -1.442695, %v504_v0 }
 0x345   :  { %v601_v49 = vmul.f32 -1.442695, %v489_v48  ;;  %v603_v52 = vmul.f32 -1.442695, %v499_v5 }
 0x346   :  { %703 = vpow2.f32 %v602_v6 }
 0x347   :  { %705 = vpow2.f32 %v601_v49 }
 0x348   :  { %707 = vpow2.f32 %v603_v52 }
 0x349   :  { %709 = vpow2.f32 %v604_v1 }
 0x350   :  { %v704_v53 = vpop.eup %703 }
 0x351   :  { %v706_v54 = vpop.eup %705  ;;  %v520_v55 = vadd.f32 1.0, %v704_v53 }
 0x352   :  { %v708_v50 = vpop.eup %707  ;;  %v519_v57 = vadd.f32 1.0, %v706_v54 }
 0x353   :  { %711 = vrcp.f32 %v520_v55  ;;  %v521_v59 = vadd.f32 1.0, %v708_v50  ;;  %v710_v51 = vpop.eup %709 }
 0x354   :  { %713 = vrcp.f32 %v519_v57  ;;  %v522_v58 = vadd.f32 1.0, %v710_v51 }
 0x355   :  { %715 = vrcp.f32 %v521_v59 }
 0x356   :  { %717 = vrcp.f32 %v522_v58 }
 0x35d   :  { %v712_v60 = vpop.eup %711 }
 0x35e   :  { %538 = vperm.xlu1 %686, %v712_v60   ;;  %v714_v61 = vpop.eup %713 }
 0x35f   :  { %v716_v56 = vpop.eup %715 }
 0x360   :  { %v718_v62 = vpop.eup %717 }
 0x362   :  { %533 = vperm.xlu1 %686, %v714_v61  }
 0x366   :  { %543 = vperm.xlu1 %686, %v716_v56  }
 0x36a   :  { %548 = vperm.xlu1 %686, %v718_v62  }
 0x3dd   :  { %v539_v63 = vpop.permute.xlu1 %538 }
 0x3de   :  { %v553_v3 = vmul.f32 %v539_v63, %v845_v14  ;;  %v554_v7 = vmul.f32 %v539_v63, %v847_v15 }
 0x3e0   :  { %562 = vst [vmem:[#allocation5 + $0x50] sm:$0xff] %v553_v3  ;;  %563 = vst [vmem:[#allocation5 + $0x58] sm:$0xff] %v554_v7 }
 0x3e1   :  { %v534_v10 = vpop.permute.xlu1 %533 }
 0x3e2   :  { %v551_v11 = vmul.f32 %v534_v10, %v849_v16  ;;  %v552_v12 = vmul.f32 %v534_v10, %v853_v18 }
 0x3e4   :  { %560 = vst [vmem:[#allocation5 + $0x40] sm:$0xff] %v551_v11  ;;  %561 = vst [vmem:[#allocation5 + $0x48] sm:$0xff] %v552_v12 }
 0x3e5   :  { %v544_v13 = vpop.permute.xlu1 %543 }
 0x3e6   :  { %v555_v17 = vmul.f32 %v544_v13, %v861_v22  ;;  %v556_v21 = vmul.f32 %v544_v13, %v863_v23 }
 0x3e8   :  { %564 = vst [vmem:[#allocation5 + $0x60] sm:$0xff] %v555_v17  ;;  %565 = vst [vmem:[#allocation5 + $0x68] sm:$0xff] %v556_v21 }
 0x3e9   :  { %v549_v14 = vpop.permute.xlu1 %548 }
 0x3ea   :  { %v557_v15 = vmul.f32 %v549_v14, %v855_v19  ;;  %v558_v24 = vmul.f32 %v549_v14, %v857_v20 }
 0x3ec   :  { %566 = vst [vmem:[#allocation5 + $0x70] sm:$0xff] %v557_v15  ;;  %567 = vst [vmem:[#allocation5 + $0x78] sm:$0xff] %v558_v24 }
 0x3ed   :  { %752 = shalt.err (!%p749_p12)
}
 0x3ee   :  { %s753_s7 = scalar_lea.hbm %s974_s5, 2048 }
 0x3ef   :  { %p754_p13 = scmp.ne.s32.totalorder %s974_s5, %s753_s7  ;;  %p757_p0 = scmp.lt.u32.totalorder %s753_s7, %s974_s5 }
 0x3f1   :  { %p759_p1 = pnand %p757_p0, %p754_p13 }
 0x3f3   :  { %762 = shalt.err (!%p759_p1)
}
 0x3f4   :  { %579 = dma.vmem_to_hbm [thread:$0]  %s574_s4, 2048, %s974_s5, [#allocation4], %s768_s28, %s768_s28, %s769_s29  }
 0x3f5   :  { %765 = dma.done.wait [#allocation4], 2048  }
 0x3f6   :  { %766 = vsyncadd [#allocation4], 4294965248 }
 0x3f7   :  { %583 = vsyncpa [#allocation3], 1 }
 0x3f8   :  { %584 = vsyncpa [#allocation4], 1 }

</bundles_post_ra>
